<compile_context>
chip_gen: v6e
topology: v6e:2x2x1
jax: 0.10.0
libtpu: 0.0.40
codegen_flags: <defaults>
</compile_context>

<pallas_src>
import functools

import jax
import jax.numpy as jnp
from jax.experimental import pallas as pl
from jax.experimental.pallas import tpu as pltpu


def _round_up(x, m):
    return (x + m - 1) // m * m


# --------------------- fused LayerNorm + Linear kernel -----------------------

def _prenorm_linear_kernel(x_ref, g_ref, bln_ref, w_ref, bias_ref, o_ref, *, eps):
    x = x_ref[...].astype(jnp.float32)                       # (bm, D)
    d = x.shape[-1]
    inv_d = jnp.float32(1.0 / d)
    # One-pass statistics: mean and E[x^2] from a single sweep over the tile.
    s = jnp.sum(x, axis=-1, keepdims=True)                    # (bm, 1)
    ssq = jnp.sum(x * x, axis=-1, keepdims=True)               # (bm, 1)
    mean = s * inv_d
    var = ssq * inv_d - mean * mean                            # biased variance
    inv = jax.lax.rsqrt(var + eps)
    y = (x - mean) * inv
    y = y * g_ref[...].astype(jnp.float32) + bln_ref[...].astype(jnp.float32)
    # Feed the normalized tile straight to the MXU (no HBM round trip).
    acc = jnp.dot(y.astype(w_ref.dtype), w_ref[...],
                  preferred_element_type=jnp.float32)
    acc = acc + bias_ref[...].astype(jnp.float32)
    o_ref[...] = acc.astype(o_ref.dtype)


def prenorm_linear_pallas(x2d, gamma, beta, w, b, *, eps=1e-5, block_rows=256):
    """Fused fn(LayerNorm(x)) for fn = Linear.

    x2d: (R, D).  gamma/beta: (D,).  w: (D, D_out).  b: (D_out,).
    Rows are padded up to a multiple of the row tile and trimmed afterwards,
    so arbitrary R is accepted.
    """
    R, D = x2d.shape
    D_out = w.shape[1]
    bm = min(block_rows, _round_up(R, 8))       # large tile, clamped for small R
    R_pad = _round_up(R, bm)
    xp = jnp.pad(x2d, ((0, R_pad - R), (0, 0))) if R_pad != R else x2d

    g2d = gamma.reshape(1, D)
    bln2d = beta.reshape(1, D)
    bias2d = b.reshape(1, D_out)

    kernel = functools.partial(_prenorm_linear_kernel, eps=eps)
    out = pl.pallas_call(
        kernel,
        out_shape=jax.ShapeDtypeStruct((R_pad, D_out), x2d.dtype),
        grid_spec=pltpu.PrefetchScalarGridSpec(
            num_scalar_prefetch=0,
            grid=(R_pad // bm,),
            in_specs=[
                pl.BlockSpec((bm, D), lambda i: (i, 0)),       # x row tile
                pl.BlockSpec((1, D), lambda i: (0, 0)),        # gamma (resident)
                pl.BlockSpec((1, D), lambda i: (0, 0)),        # beta  (resident)
                pl.BlockSpec((D, D_out), lambda i: (0, 0)),    # W     (resident)
                pl.BlockSpec((1, D_out), lambda i: (0, 0)),    # bias  (resident)
            ],
            out_specs=pl.BlockSpec((bm, D_out), lambda i: (i, 0)),
        ),
        compiler_params=pltpu.CompilerParams(
            dimension_semantics=("parallel",)),
    )(xp, g2d, bln2d, w, bias2d)
    return out[:R] if R_pad != R else out


# ------------------------ standalone LayerNorm kernel ------------------------
# Used when `fn` is an arbitrary callable that cannot be fused.

def _layernorm_kernel(x_ref, g_ref, b_ref, o_ref, *, eps):
    x = x_ref[...].astype(jnp.float32)                        # (bm, D)
    d = x.shape[-1]
    inv_d = jnp.float32(1.0 / d)
    s = jnp.sum(x, axis=-1, keepdims=True)
    ssq = jnp.sum(x * x, axis=-1, keepdims=True)
    mean = s * inv_d
    var = ssq * inv_d - mean * mean
    inv = jax.lax.rsqrt(var + eps)
    y = (x - mean) * inv
    y = y * g_ref[...].astype(jnp.float32) + b_ref[...].astype(jnp.float32)
    o_ref[...] = y.astype(o_ref.dtype)


def layernorm_pallas(x2d, gamma, beta, *, eps=1e-5, block_rows=256):
    """x2d: (R, D).  Normalizes over the last dim (biased var, eps=1e-5)."""
    R, D = x2d.shape
    bm = min(block_rows, _round_up(R, 8))
    R_pad = _round_up(R, bm)
    xp = jnp.pad(x2d, ((0, R_pad - R), (0, 0))) if R_pad != R else x2d
    g2d = gamma.reshape(1, D)
    b2d = beta.reshape(1, D)

    kernel = functools.partial(_layernorm_kernel, eps=eps)
    out = pl.pallas_call(
        kernel,
        out_shape=jax.ShapeDtypeStruct((R_pad, D), x2d.dtype),
        grid_spec=pltpu.PrefetchScalarGridSpec(
            num_scalar_prefetch=0,
            grid=(R_pad // bm,),
            in_specs=[
                pl.BlockSpec((bm, D), lambda i: (i, 0)),
                pl.BlockSpec((1, D), lambda i: (0, 0)),
                pl.BlockSpec((1, D), lambda i: (0, 0)),
            ],
            out_specs=pl.BlockSpec((bm, D), lambda i: (i, 0)),
        ),
        compiler_params=pltpu.CompilerParams(
            dimension_semantics=("parallel",)),
    )(xp, g2d, b2d)
    return out[:R] if R_pad != R else out


# ---------------------------------- PreNorm ----------------------------------

class PreNormPallas:
    """Mirror of the PyTorch PreNorm: fn(LayerNorm(x)).

    If `linear=(W, b)` is given, fn is that Linear and the whole op is fused
    into one pallas_call.  Otherwise `fn` is an arbitrary callable applied to
    the output of the standalone LayerNorm kernel.
    """

    def __init__(self, dim, gamma, beta, *, fn=None, linear=None, eps=1e-5):
        assert (fn is None) != (linear is None), "give exactly one of fn/linear"
        self.dim = dim
        self.gamma = gamma
        self.beta = beta
        self.eps = eps
        self.fn = fn
        self.linear = linear

    def __call__(self, x, **kwargs):
        lead = x.shape[:-1]
        x2d = x.reshape(-1, self.dim)
        if self.linear is not None:
            w, b = self.linear
            out2d = prenorm_linear_pallas(x2d, self.gamma, self.beta, w, b,
                                          eps=self.eps)
            return out2d.reshape(*lead, w.shape[1])
        # TODO(synk): arbitrary `fn` callables cannot be fused generically;
        # they run on the LayerNorm kernel's output.
        y2d = layernorm_pallas(x2d, self.gamma, self.beta, eps=self.eps)
        return self.fn(y2d.reshape(*lead, self.dim), **kwargs)


# --------------------------------- reference ---------------------------------

def layernorm_ref(x, gamma, beta, eps=1e-5):
    mean = jnp.mean(x, axis=-1, keepdims=True)
    var = jnp.mean((x - mean) ** 2, axis=-1, keepdims=True)
    return (x - mean) * jax.lax.rsqrt(var + eps) * gamma + beta


if __name__ == "__main__":
    key = jax.random.PRNGKey(0)
    B, N, D = 2, 8, 128          # batch=2, seq=8, hidden=128 (lane-dense)

    k_x, k_g, k_b, k_w, k_lb = jax.random.split(key, 5)
    x = jax.random.normal(k_x, (B, N, D), dtype=jnp.float32)

    # LayerNorm params (deterministic perturbation of the default ones/zeros).
    gamma = jnp.ones((D,), jnp.float32) + 0.1 * jax.random.normal(k_g, (D,))
    beta = 0.1 * jax.random.normal(k_b, (D,), dtype=jnp.float32)

    # fn = Linear(dim, dim), deterministic weights.
    w = 0.05 * jax.random.normal(k_w, (D, D), dtype=jnp.float32)
    lb = 0.05 * jax.random.normal(k_lb, (D,), dtype=jnp.float32)

    # --- fused path: PreNorm with a Linear fn (single pallas_call) ---
    prenorm_fused = PreNormPallas(D, gamma, beta, linear=(w, lb))
    out = jax.block_until_ready(prenorm_fused(x))

    ref = layernorm_ref(x, gamma, beta) @ w + lb
    assert out.shape == (B, N, D)
    assert jnp.allclose(out, ref, atol=1e-4, rtol=1e-4), (
        float(jnp.max(jnp.abs(out - ref))))

    # --- generic path: PreNorm with an arbitrary fn (LayerNorm kernel only) ---
    prenorm_generic = PreNormPallas(D, gamma, beta, fn=lambda y: y)
    out_ln = jax.block_until_ready(prenorm_generic(x))
    ref_ln = layernorm_ref(x, gamma, beta)
    assert jnp.allclose(out_ln, ref_ln, atol=1e-4, rtol=1e-4), (
        float(jnp.max(jnp.abs(out_ln - ref_ln))))

    print("KERNEL_OK")
</pallas_src>

<mosaic_0001>
module attributes {stable_mosaic.version = 11 : i64} {
  func.func @_prenorm_linear_kernel(%arg0: i32, %arg1: memref<16x128xf32, #tpu.memory_space<vmem>>, %arg2: memref<1x128xf32, #tpu.memory_space<vmem>>, %arg3: memref<1x128xf32, #tpu.memory_space<vmem>>, %arg4: memref<128x128xf32, #tpu.memory_space<vmem>>, %arg5: memref<1x128xf32, #tpu.memory_space<vmem>>, %arg6: memref<16x128xf32, #tpu.memory_space<vmem>>) attributes {dimension_semantics = [#tpu.dimension_semantics<parallel>], iteration_bounds = array<i64: 1>, scalar_prefetch = 0 : i64, scratch_operands = 0 : i64, tpu.core_type = #tpu.core_type<tc>, window_params = [{transform_indices = @transform_0, window_bounds = array<i64: 16, 128>}, {pipeline_mode = #tpu.pipeline_mode<synchronous>, transform_indices = @transform_1, window_bounds = array<i64: 1, 128>}, {pipeline_mode = #tpu.pipeline_mode<synchronous>, transform_indices = @transform_2, window_bounds = array<i64: 1, 128>}, {pipeline_mode = #tpu.pipeline_mode<synchronous>, transform_indices = @transform_3, window_bounds = array<i64: 128, 128>}, {pipeline_mode = #tpu.pipeline_mode<synchronous>, transform_indices = @transform_4, window_bounds = array<i64: 1, 128>}, {transform_indices = @transform_5, window_bounds = array<i64: 16, 128>}]} {
    %c0 = arith.constant 0 : index
    %c0_0 = arith.constant 0 : index
    %0 = vector.load %arg1[%c0, %c0_0] : memref<16x128xf32, #tpu.memory_space<vmem>>, vector<16x128xf32>
    %cst = arith.constant dense<0.000000e+00> : vector<16xf32>
    %1 = vector.multi_reduction <add>, %0, %cst [1] : vector<16x128xf32> to vector<16xf32>
    %2 = vector.shape_cast %1 : vector<16xf32> to vector<16x1xf32>
    %3 = arith.mulf %0, %0 : vector<16x128xf32>
    %cst_1 = arith.constant dense<0.000000e+00> : vector<16xf32>
    %4 = vector.multi_reduction <add>, %3, %cst_1 [1] : vector<16x128xf32> to vector<16xf32>
    %5 = vector.shape_cast %4 : vector<16xf32> to vector<16x1xf32>
    %cst_2 = arith.constant 7.812500e-03 : f32
    %6 = vector.broadcast %cst_2 : f32 to vector<16x1xf32>
    %7 = arith.mulf %2, %6 : vector<16x1xf32>
    %cst_3 = arith.constant 7.812500e-03 : f32
    %8 = vector.broadcast %cst_3 : f32 to vector<16x1xf32>
    %9 = arith.mulf %5, %8 : vector<16x1xf32>
    %10 = arith.mulf %7, %7 : vector<16x1xf32>
    %11 = arith.subf %9, %10 : vector<16x1xf32>
    %cst_4 = arith.constant 9.99999974E-6 : f32
    %12 = vector.broadcast %cst_4 : f32 to vector<16x1xf32>
    %13 = arith.addf %11, %12 : vector<16x1xf32>
    %14 = math.rsqrt %13 : vector<16x1xf32>
    %15 = vector.broadcast %7 : vector<16x1xf32> to vector<16x128xf32>
    %16 = arith.subf %0, %15 : vector<16x128xf32>
    %17 = vector.broadcast %14 : vector<16x1xf32> to vector<16x128xf32>
    %18 = arith.mulf %16, %17 : vector<16x128xf32>
    %c0_5 = arith.constant 0 : index
    %c0_6 = arith.constant 0 : index
    %19 = vector.load %arg2[%c0_5, %c0_6] : memref<1x128xf32, #tpu.memory_space<vmem>>, vector<1x128xf32>
    %20 = vector.broadcast %19 : vector<1x128xf32> to vector<16x128xf32>
    %21 = arith.mulf %18, %20 : vector<16x128xf32>
    %c0_7 = arith.constant 0 : index
    %c0_8 = arith.constant 0 : index
    %22 = vector.load %arg3[%c0_7, %c0_8] : memref<1x128xf32, #tpu.memory_space<vmem>>, vector<1x128xf32>
    %23 = vector.broadcast %22 : vector<1x128xf32> to vector<16x128xf32>
    %24 = arith.addf %21, %23 : vector<16x128xf32>
    %c0_9 = arith.constant 0 : index
    %c0_10 = arith.constant 0 : index
    %25 = vector.load %arg4[%c0_9, %c0_10] : memref<128x128xf32, #tpu.memory_space<vmem>>, vector<128x128xf32>
    %cst_11 = arith.constant dense<0.000000e+00> : vector<16x128xf32>
    %26 = tpu.matmul %24, %25, %cst_11 {dimension_numbers = #tpu.dot_dimension_numbers<[1], [0], [0], [1], [0, 0, 1, 1], [], []>} : vector<16x128xf32>, vector<128x128xf32>, vector<16x128xf32> -> vector<16x128xf32>
    %c0_12 = arith.constant 0 : index
    %c0_13 = arith.constant 0 : index
    %27 = vector.load %arg5[%c0_12, %c0_13] : memref<1x128xf32, #tpu.memory_space<vmem>>, vector<1x128xf32>
    %28 = vector.broadcast %27 : vector<1x128xf32> to vector<16x128xf32>
    %29 = arith.addf %26, %28 : vector<16x128xf32>
    %c0_14 = arith.constant 0 : index
    %c0_15 = arith.constant 0 : index
    %30 = vector.load %arg6[%c0_14, %c0_15] : memref<16x128xf32, #tpu.memory_space<vmem>>, vector<16x128xf32>
    tpu.vector_store %arg6[%c0_14, %c0_15], %29 {strides = array<i32>} : memref<16x128xf32, #tpu.memory_space<vmem>>, vector<16x128xf32>,
    return
  }
  func.func @transform_0(%arg0: i32) -> (i32, i32) {
    %c0_i32 = arith.constant 0 : i32
    %c0_i32_0 = arith.constant 0 : i32
    return %arg0, %c0_i32 : i32, i32
  }
  func.func @transform_1(%arg0: i32) -> (i32, i32) {
    %c0_i32 = arith.constant 0 : i32
    %c0_i32_0 = arith.constant 0 : i32
    %c0_i32_1 = arith.constant 0 : i32
    return %c0_i32, %c0_i32_0 : i32, i32
  }
  func.func @transform_2(%arg0: i32) -> (i32, i32) {
    %c0_i32 = arith.constant 0 : i32
    %c0_i32_0 = arith.constant 0 : i32
    %c0_i32_1 = arith.constant 0 : i32
    return %c0_i32, %c0_i32_0 : i32, i32
  }
  func.func @transform_3(%arg0: i32) -> (i32, i32) {
    %c0_i32 = arith.constant 0 : i32
    %c0_i32_0 = arith.constant 0 : i32
    %c0_i32_1 = arith.constant 0 : i32
    return %c0_i32, %c0_i32_0 : i32, i32
  }
  func.func @transform_4(%arg0: i32) -> (i32, i32) {
    %c0_i32 = arith.constant 0 : i32
    %c0_i32_0 = arith.constant 0 : i32
    %c0_i32_1 = arith.constant 0 : i32
    return %c0_i32, %c0_i32_0 : i32, i32
  }
  func.func @transform_5(%arg0: i32) -> (i32, i32) {
    %c0_i32 = arith.constant 0 : i32
    %c0_i32_0 = arith.constant 0 : i32
    return %arg0, %c0_i32 : i32, i32
  }
}

</mosaic_0001>

<bundles_post_ra>
// kernel: tpu_custom_call.1
= control target key start
LH: loop header
LB: loop body
LE: loop exit
PB: predicated region body
PF: predicated region fallthrough
CT: control target
= control target key end

     0   :  { %10 = vsyncpa [#allocation3], 0  ;;  %s418_s0 = inlined_call_operand.hbm [shape: f32[16,128], index: 0, kind: input, shape index: {}]   ;;  %s419_s1 = inlined_call_operand.vmem [shape: f32[1,128], index: 1, kind: input, shape index: {}]   ;;  %s420_s2 = inlined_call_operand.vmem [shape: f32[1,128], index: 2, kind: input, shape index: {}]   ;;  %s421_s3 = inlined_call_operand.hbm [shape: f32[128,128], index: 3, kind: input, shape index: {}]   ;;  %s422_s4 = inlined_call_operand.vmem [shape: f32[1,128], index: 4, kind: input, shape index: {}]   ;;  %s423_s5 = inlined_call_operand.hbm [shape: f32[16,128], index: 5, kind: output, shape index: {}]  }
   0x1   :  { %11 = vsyncpa [#allocation6], 0 }
   0x2   :  { %12 = vsyncpa [#allocation4], 0  ;;  %s344_s18 = smov [#allocation2]  }
   0x3   :  { %s18_s19 = sshll.u32 %s344_s18, 4  ;;  %s19_s19 = int_to_ptr.vmem [resolvable:$true] %s18_s19 }
   0x4   :  { %s286_s20 = scalar_lea.vmem %s19_s19, 256  ;;  %p291_p1 = scmp.lt.s32.totalorder %s19_s19, %s19_s19 }
   0x5   :  { %p287_p0 = scmp.ne.s32.totalorder %s19_s19, %s286_s20  ;;  %p292_p2 = scmp.lt.s32.totalorder %s286_s20, %s286_s20 }
   0x7   :  { %p293_p3 = por %p292_p2, %p291_p1 }
   0x9   :  { %p294_p4 = pnand %p293_p3, %p287_p0 }
   0xb   :  { %297 = shalt.err (!%p294_p4)
}
   0xc   :  { %s345_s21 = smov 128   ;;  %s346_s22 = smov 8  }
   0xd   :  { %24 = dma.hbm_to_vmem [thread:$0]  %s418_s0, 256, %s19_s19, [#allocation3], %s345_s21, %s345_s21, %s346_s22  }
   0xe   :  { %s347_s25 = smov [#allocation5]  }
   0xf   :  { %s34_s26 = sshll.u32 %s347_s25, 4  ;;  %s35_s26 = int_to_ptr.vmem [resolvable:$true] %s34_s26 }
  0x10   :  { %s306_s27 = scalar_lea.vmem %s35_s26, 2048  ;;  %p311_p6 = scmp.lt.s32.totalorder %s35_s26, %s35_s26 }
  0x11   :  { %p307_p5 = scmp.ne.s32.totalorder %s35_s26, %s306_s27  ;;  %p312_p7 = scmp.lt.s32.totalorder %s306_s27, %s306_s27 }
  0x13   :  { %p313_p8 = por %p312_p7, %p311_p6 }
  0x15   :  { %p314_p9 = pnand %p313_p8, %p307_p5 }
  0x17   :  { %317 = shalt.err (!%p314_p9)
}
  0x18   :  { %40 = dma.hbm_to_vmem [thread:$0]  %s421_s3, 2048, %s35_s26, [#allocation6], %s345_s21, %s345_s21, %s346_s22  }
  0x19   :  { %338 = dma.done.wait [#allocation3], 256  }
  0x1a   :  { %339 = vsyncadd [#allocation3], 4294967040 }
  0x1b   :  { %340 = dma.done.wait [#allocation6], 2048  }
  0x1c   :  { %341 = vsyncadd [#allocation6], 4294965248  ;;  %v391_v0 = vld [vmem:[#allocation2] sm:$0xff]  ;;  %v393_v1 = vld [vmem:[#allocation2 + $0x8] sm:$0xff] }
  0x1d   :  { %51 = vadd.xlane.f32.xlu0 %v391_v0  ;;  %v55_v2 = vmul.f32 %v391_v0, %v391_v0  ;;  %v56_v3 = vmul.f32 %v393_v1, %v393_v1  ;;  %v110_v4 = vld [vmem:[#allocation5 + $0x78] sm:$0xff]  ;;  %v109_v5 = vld [vmem:[#allocation5 + $0x70] sm:$0xff]  ;;  %v108_v6 = vld [vmem:[#allocation5 + $0x68] sm:$0xff] }
  0x1e   :  { %234 = vmatprep.subr.mxu0 %v110_v4  ;;  %v107_v7 = vld [vmem:[#allocation5 + $0x60] sm:$0xff]  ;;  %v106_v8 = vld [vmem:[#allocation5 + $0x58] sm:$0xff]  ;;  %v105_v9 = vld [vmem:[#allocation5 + $0x50] sm:$0xff] }
  0x1f   :  { %57 = vadd.xlane.f32.xlu1 %v55_v2  ;;  %235 = vmatpush3.msra.mxu0 %v110_v4  ;;  %v104_v10 = vld [vmem:[#allocation5 + $0x48] sm:$0xff]  ;;  %v103_v11 = vld [vmem:[#allocation5 + $0x40] sm:$0xff]  ;;  %v102_v12 = vld [vmem:[#allocation5 + $0x38] sm:$0xff] }
  0x20   :  { %236 = vmatprep.subr.mxu0 %v109_v5  ;;  %v101_v13 = vld [vmem:[#allocation5 + $0x30] sm:$0xff]  ;;  %v100_v14 = vld [vmem:[#allocation5 + $0x28] sm:$0xff]  ;;  %v99_v15 = vld [vmem:[#allocation5 + $0x20] sm:$0xff] }
  0x21   :  { %53 = vadd.xlane.f32.xlu0 %v393_v1  ;;  %237 = vmatpush3.msra.mxu0 %v109_v5  ;;  %v98_v16 = vld [vmem:[#allocation5 + $0x18] sm:$0xff]  ;;  %v97_v17 = vld [vmem:[#allocation5 + $0x10] sm:$0xff]  ;;  %v96_v18 = vld [vmem:[#allocation5 + $0x8] sm:$0xff] }
  0x22   :  { %238 = vmatprep.subr.mxu0 %v108_v6  ;;  %v95_v19 = vld [vmem:[#allocation5] sm:$0xff]  ;;  %v213_v36 = vld [vmem:[%s419_s1] ss:$0 sm:$0xff]  ;;  %s348_s1 = smov [#allocation7]  }
  0x23   :  { %59 = vadd.xlane.f32.xlu1 %v56_v3  ;;  %239 = vmatpush3.msra.mxu0 %v108_v6  ;;  %v214_v38 = vld [vmem:[%s420_s2] ss:$0 sm:$0xff]  ;;  %s200_s9 = sshll.u32 %s348_s1, 4  ;;  %s201_s9 = int_to_ptr.vmem [resolvable:$true] %s200_s9 }
  0x24   :  { %240 = vmatprep.subr.mxu0 %v107_v7  ;;  %v215_v46 = vld [vmem:[%s422_s4] ss:$0 sm:$0xff]  ;;  %s318_s2 = scalar_lea.vmem %s201_s9, 256  ;;  %p323_p11 = scmp.lt.s32.totalorder %s201_s9, %s201_s9 }
  0x25   :  { %241 = vmatpush3.msra.mxu0 %v107_v7  ;;  %p319_p10 = scmp.ne.s32.totalorder %s201_s9, %s318_s2  ;;  %p324_p12 = scmp.lt.s32.totalorder %s318_s2, %s318_s2 }
  0x26   :  { %242 = vmatprep.subr.mxu0 %v106_v8 }
  0x27   :  { %243 = vmatpush3.msra.mxu0 %v106_v8  ;;  %p325_p13 = por %p324_p12, %p323_p11 }
  0x28   :  { %244 = vmatprep.subr.mxu0 %v105_v9 }
  0x29   :  { %245 = vmatpush3.msra.mxu0 %v105_v9  ;;  %p326_p0 = pnand %p325_p13, %p319_p10 }
  0x2a   :  { %246 = vmatprep.subr.mxu0 %v104_v10 }
  0x2b   :  { %247 = vmatpush3.msra.mxu0 %v104_v10 }
  0x2c   :  { %248 = vmatprep.subr.mxu0 %v103_v11 }
  0x2d   :  { %249 = vmatpush3.msra.mxu0 %v103_v11 }
  0x2e   :  { %250 = vmatprep.subr.mxu0 %v102_v12 }
  0x2f   :  { %251 = vmatpush3.msra.mxu0 %v102_v12 }
  0x30   :  { %252 = vmatprep.subr.mxu0 %v101_v13 }
  0x31   :  { %253 = vmatpush3.msra.mxu0 %v101_v13 }
  0x32   :  { %254 = vmatprep.subr.mxu0 %v100_v14 }
  0x33   :  { %255 = vmatpush3.msra.mxu0 %v100_v14 }
  0x34   :  { %256 = vmatprep.subr.mxu0 %v99_v15 }
  0x35   :  { %257 = vmatpush3.msra.mxu0 %v99_v15 }
  0x36   :  { %258 = vmatprep.subr.mxu0 %v98_v16 }
  0x37   :  { %259 = vmatpush3.msra.mxu0 %v98_v16 }
  0x38   :  { %260 = vmatprep.subr.mxu0 %v97_v17 }
  0x39   :  { %261 = vmatpush3.msra.mxu0 %v97_v17 }
  0x3a   :  { %262 = vmatprep.subr.mxu0 %v96_v18 }
  0x3b   :  { %263 = vmatpush3.msra.mxu0 %v96_v18 }
  0x3c   :  { %264 = vmatprep.subr.mxu0 %v95_v19 }
  0x3d   :  { %265 = vmatpush3.msra.mxu0 %v95_v19 }
  0xa6   :  { %v52_v20 = vpop.xlane.xlu0 %51 }
  0xa7   :  { %v61_v21 = vmul.f32 0.0078125, %v52_v20 }
  0xa8   :  { %v58_v22 = vpop.xlane.xlu1 %57 }
  0xa9   :  { %v65_v23 = vmul.f32 %v61_v21, %v61_v21  ;;  %v63_v24 = vmul.f32 0.0078125, %v58_v22  ;;  %v73_v34 = vsub.f32 %v391_v0, %v61_v21 }
  0xaa   :  { %v54_v25 = vpop.xlane.xlu0 %53 }
  0xab   :  { %v67_v26 = vsub.f32 %v63_v24, %v65_v23  ;;  %v62_v27 = vmul.f32 0.0078125, %v54_v25 }
  0xac   :  { %v60_v28 = vpop.xlane.xlu1 %59 }
  0xad   :  { %v69_v29 = vadd.f32 1e-05, %v67_v26  ;;  %v66_v30 = vmul.f32 %v62_v27, %v62_v27  ;;  %v64_v31 = vmul.f32 0.0078125, %v60_v28  ;;  %v74_v39 = vsub.f32 %v393_v1, %v62_v27 }
  0xaf   :  { %274 = vrsqrt.f32 %v69_v29  ;;  %v68_v32 = vsub.f32 %v64_v31, %v66_v30 }
  0xb1   :  { %v70_v33 = vadd.f32 1e-05, %v68_v32 }
  0xb3   :  { %276 = vrsqrt.f32 %v70_v33 }
  0xbc   :  { %v275_v35 = vpop.eup %274 }
  0xbd   :  { %v75_v37 = vmul.f32 %v275_v35, %v73_v34 }
  0xbf   :  { %v84_v40 = vmul.f32 %v213_v36, %v75_v37 }
  0xc0   :  { %v277_v41 = vpop.eup %276 }
  0xc1   :  { %v76_v42 = vmul.f32 %v277_v41, %v74_v39  ;;  %v93_v43 = vadd.f32 %v214_v38, %v84_v40 }
  0xc3   :  { %v85_v44 = vmul.f32 %v213_v36, %v76_v42  ;;  %266 = vmatprep.mubr.f32.mxu0 %v93_v43 }
  0xc5   :  { %v94_v45 = vadd.f32 %v214_v38, %v85_v44 }
  0xc7   :  { %267 = vmatmul.mubr.f32.vlgmr.msra.gmra.mxu0 %v94_v45 }
 0x187   :  { %v268_v47 = vpop.f32.mrf.mxu0 }
 0x188   :  { %v190_v48 = vadd.f32 %v268_v47, %v215_v46 }
 0x189   :  { %v184_v49 = vpop.f32.mrf.mxu0 }
 0x18a   :  { %194 = vst [vmem:[#allocation7 + $0x8] sm:$0xff] %v190_v48  ;;  %v185_v50 = vadd.f32 %v215_v46, %v184_v49 }
 0x18c   :  { %193 = vst [vmem:[#allocation7] sm:$0xff] %v185_v50 }
 0x18d   :  { %329 = shalt.err (!%p326_p0)
}
 0x18e   :  { %206 = dma.vmem_to_hbm [thread:$0]  %s201_s9, 256, %s423_s5, [#allocation4], %s345_s21, %s345_s21, %s346_s22  }
 0x18f   :  { %342 = dma.done.wait [#allocation4], 256  }
 0x190   :  { %343 = vsyncadd [#allocation4], 4294967040 }
 0x191   :  { %210 = vsyncpa [#allocation3], 1 }
 0x192   :  { %211 = vsyncpa [#allocation6], 1 }
 0x193   :  { %212 = vsyncpa [#allocation4], 1 }

</bundles_post_ra>
